<compile_context>
chip_gen: v7x
topology: tpu7x:2x2x1
jax: 0.10.0
libtpu: 0.0.40
codegen_flags: <defaults>
</compile_context>

<pallas_src>
import jax
import jax.numpy as jnp
from jax import lax
from jax.experimental import pallas as pl
from jax.experimental.pallas import tpu as pltpu

# ---- config (mirrors `args`) -------------------------------------------------
VOCAB = 50            # args.vocab_size
VOCAB_PAD = 128       # padded vocab so the one-hot gather-matmul is full-lane
EMBED = 128           # args.embed_size
SEQ = 16              # sentence length
FILTERS = 32          # args.cnn_num_filters
KSIZES = (2, 3, 4)    # args.cnn_filter_sizes
HIDDEN = 32           # args.hidden_dim
NUM_LABEL = 4         # args.num_label (C)
BATCH = 4

GROUP = 128                     # 3 branches * FILTERS = 96, padded to 128 lanes
NTAPS = max(KSIZES)             # 4 shift groups
N_ALL = NTAPS * GROUP           # 512 fused conv-output columns
BL = BATCH * SEQ                # 64 rows for the fused matmul (multiple of 8)
CONST_LANE = len(KSIZES) * FILTERS   # lane 96: constant-1 feature (bias carrier)

# column layout of the single packed weight tensor (128 rows x 768 lanes, f32)
W_OFF_CONV = 0                  # [:, 0:512]   embedding-folded conv taps
W_OFF_WL = N_ALL                # [:, 512:640] hidden linear (+ biases in row 96)
W_OFF_CONST = N_ALL + GROUP     # [:, 640:768] rows 0:64 mask, rows 64:128 addplane
W_COLS = N_ALL + 2 * GROUP      # 768


def siamese_kernel(ids_ref, wp_ref, out_ref):
    # ---- embedding gather + all conv taps: ONE (BL,128)@(128,512) matmul -----
    ids = ids_ref[...]                                           # (BL, 1) int32
    lanes = lax.broadcasted_iota(jnp.int32, (BL, VOCAB_PAD), 1)
    onehot = (lanes == ids).astype(jnp.float32)                  # (BL, 128)
    S = jnp.dot(onehot, wp_ref[:, W_OFF_CONV:W_OFF_CONV + N_ALL],
                preferred_element_type=jnp.float32)              # (BL, 512) f32
    # (dropout_half / dropout are identity at inference)

    # Shift group j holds tap-j weights of every branch; conv output at time t
    # needs row t+j of group j -> sublane roll by -j (mod BL).  Tree-form adds.
    g0 = S[:, 0:GROUP]
    g1 = pltpu.roll(S[:, GROUP:2 * GROUP], shift=BL - 1, axis=0)
    g2 = pltpu.roll(S[:, 2 * GROUP:3 * GROUP], shift=BL - 2, axis=0)
    g3 = pltpu.roll(S[:, 3 * GROUP:4 * GROUP], shift=BL - 3, axis=0)
    conv = (g0 + g1) + (g2 + g3)                                 # (BL, 128)

    # ---- precomputed masking: masked = (conv + bias) on valid rows, else 0 ---
    # addplane also carries 1.0 in lane CONST_LANE (constant feature for biases).
    mask = wp_ref[0:BL, W_OFF_CONST:W_OFF_CONST + GROUP]         # (BL, 128)
    addp = wp_ref[BL:2 * BL, W_OFF_CONST:W_OFF_CONST + GROUP]    # (BL, 128)
    masked = conv * mask + addp

    # ---- global max-pool over time (== max(ReLU(conv+b)) since invalid = 0) --
    pooled = jnp.max(masked.reshape(BATCH, SEQ, GROUP), axis=1)  # (B, 128)
    # lanes 0:96 = [o1|o2|o3], lane 96 = 1.0 (bias carrier), lanes 97:128 = 0

    # ---- hidden linear + degenerate head, fused into one matmul --------------
    # wl_pad rows 0:96 = lin_w.T, row 96 = [lin_b | out_b | 0...], rest 0, so
    #   out[:, 0:32]  = CNN hidden vector (feat @ lin_w.T + lin_b)
    #   out[:, 32:36] = linear_out bias == logits of the degenerate head
    #                   (out1 == out2 -> |out1-out2| == 0 -> logits == bias).
    pooled8 = jnp.concatenate([pooled, pooled], axis=0)          # (8, 128) dense
    out_ref[...] = jnp.dot(pooled8, wp_ref[:, W_OFF_WL:W_OFF_WL + GROUP],
                           preferred_element_type=jnp.float32)   # one dense vst


# ---- parameters ---------------------------------------------------------------
def init_raw_params(key):
    """Parameters laid out like the PyTorch module (torch tensor shapes)."""
    ks = jax.random.split(key, 6)

    def winit(k, shape, fan_in):
        return jax.random.normal(k, shape, jnp.float32) / jnp.sqrt(float(fan_in))

    return {
        "ebd": winit(ks[0], (VOCAB, EMBED), EMBED),
        # Conv2d weights in torch layout (out_ch=F, in_ch=1, k, E); biases (F,)
        "conv1_w": winit(ks[1], (FILTERS, 1, KSIZES[0], EMBED), KSIZES[0] * EMBED),
        "conv1_b": 0.01 * jnp.arange(FILTERS, dtype=jnp.float32),
        "conv2_w": winit(ks[2], (FILTERS, 1, KSIZES[1], EMBED), KSIZES[1] * EMBED),
        "conv2_b": 0.02 * jnp.arange(FILTERS, dtype=jnp.float32),
        "conv3_w": winit(ks[3], (FILTERS, 1, KSIZES[2], EMBED), KSIZES[2] * EMBED),
        "conv3_b": 0.03 * jnp.arange(FILTERS, dtype=jnp.float32),
        # nn.Linear stores (out, in)
        "lin_w": winit(ks[4], (HIDDEN, FILTERS * len(KSIZES)), FILTERS * len(KSIZES)),
        "lin_b": 0.05 * jnp.arange(HIDDEN, dtype=jnp.float32),
        "out_w": winit(ks[5], (NUM_LABEL, HIDDEN), HIDDEN),
        "out_b": jnp.array([0.1, -0.2, 0.3, -0.4], dtype=jnp.float32),
    }


def pack_params(raw):
    """One-time fold/pad of torch-layout weights into a single (128,768) tensor."""
    f32 = jnp.float32
    assert VOCAB_PAD == GROUP  # consts share the 128-row slab with the weights

    # --- fused conv-tap weights, with the embedding table folded in (f32) -----
    ebd_pad = jnp.zeros((VOCAB_PAD, EMBED), f32).at[:VOCAB].set(raw["ebd"])
    conv_w = (raw["conv1_w"], raw["conv2_w"], raw["conv3_w"])
    conv_b = (raw["conv1_b"], raw["conv2_b"], raw["conv3_b"])
    w_all = jnp.zeros((EMBED, N_ALL), f32)
    for j in range(NTAPS):                       # shift group (time offset j)
        for bidx, k in enumerate(KSIZES):        # branch column block
            if j < k:
                tap = conv_w[bidx][:, 0, j, :].T                    # (E, F)
                c0 = j * GROUP + bidx * FILTERS
                w_all = w_all.at[:, c0:c0 + FILTERS].set(tap)
    w_fused = jnp.dot(ebd_pad, w_all, precision=lax.Precision.HIGHEST)  # (128,512)

    # --- hidden linear, with lin_b and out_b riding on the constant-1 lane ----
    wl_pad = jnp.zeros((GROUP, GROUP), f32)
    wl_pad = wl_pad.at[:len(KSIZES) * FILTERS, :HIDDEN].set(raw["lin_w"].T)
    wl_pad = wl_pad.at[CONST_LANE, :HIDDEN].set(raw["lin_b"])
    wl_pad = wl_pad.at[CONST_LANE, HIDDEN:HIDDEN + NUM_LABEL].set(raw["out_b"])

    # --- precomputed validity mask and (bias*mask + const-1 lane) plane -------
    kcols = jnp.zeros((GROUP,), jnp.int32)
    bias_lane = jnp.zeros((GROUP,), f32)
    for bidx, k in enumerate(KSIZES):
        kcols = kcols.at[bidx * FILTERS:(bidx + 1) * FILTERS].set(k)
        bias_lane = bias_lane.at[bidx * FILTERS:(bidx + 1) * FILTERS].set(conv_b[bidx])
    tlim = jnp.where(kcols > 0, SEQ - kcols + 1, 0)               # valid t < tlim
    t = (jnp.arange(BL, dtype=jnp.int32) % SEQ)[:, None]          # (BL, 1)
    mask = (t < tlim[None, :]).astype(f32)                        # (BL, 128)
    addplane = mask * bias_lane[None, :]
    addplane = addplane.at[:, CONST_LANE].set(1.0)                # const-1 feature
    consts = jnp.concatenate([mask, addplane], axis=0)            # (128, 128)

    return jnp.concatenate([w_fused, wl_pad, consts], axis=1)     # (128, 768) f32


# ---- pallas_call wrapper ------------------------------------------------------
_VMEM = pl.BlockSpec(memory_space=pltpu.MemorySpace.VMEM)


@jax.jit
def siamese_forward(claim_ids, sentence_ids, wpack):
    # `claim` is unused by the reference forward (out1 is set equal to out2);
    # it is accepted only to keep the module's call signature.
    del claim_ids
    ids2d = sentence_ids.reshape(BL, 1).astype(jnp.int32)
    out = pl.pallas_call(
        siamese_kernel,
        out_shape=jax.ShapeDtypeStruct((8, GROUP), jnp.float32),
        in_specs=[_VMEM, _VMEM],
        out_specs=_VMEM,
    )(ids2d, wpack)
    hid = out[:BATCH, :HIDDEN]                       # CNN hidden representation
    logits = out[:BATCH, HIDDEN:HIDDEN + NUM_LABEL]  # SiameseModel output
    return logits, hid


# ---- pure-JAX reference (f32) for verification ---------------------------------
def reference_forward(sentence_ids, raw):
    x = raw["ebd"][sentence_ids]                                     # (B, L, E)
    pools = []
    for w, b, k in ((raw["conv1_w"], raw["conv1_b"], KSIZES[0]),
                    (raw["conv2_w"], raw["conv2_b"], KSIZES[1]),
                    (raw["conv3_w"], raw["conv3_b"], KSIZES[2])):
        T = SEQ - k + 1
        windows = jnp.stack([x[:, j:j + T, :] for j in range(k)], axis=2)  # (B,T,k,E)
        conv = jnp.einsum("btje,fje->btf", windows, w[:, 0],
                          precision=lax.Precision.HIGHEST) + b[None, None, :]
        pools.append(jnp.max(jnp.maximum(conv, 0.0), axis=1))            # (B, F)
    feat = jnp.concatenate(pools, axis=-1)                               # (B, 3F)
    hid = feat @ raw["lin_w"].T + raw["lin_b"][None, :]
    out2 = jax.nn.sigmoid(hid)
    dist = jnp.abs(out2 - out2)                                          # == 0
    logits = dist @ raw["out_w"].T + raw["out_b"][None, :]
    return logits, hid


if __name__ == "__main__":
    key = jax.random.PRNGKey(0)
    pkey, ckey, skey = jax.random.split(key, 3)
    raw = init_raw_params(pkey)
    wpack = pack_params(raw)            # one-time weight fusion/folding/padding

    claim = jax.random.randint(ckey, (BATCH, SEQ), 0, VOCAB, dtype=jnp.int32)
    sentence = jax.random.randint(skey, (BATCH, SEQ), 0, VOCAB, dtype=jnp.int32)

    logits, hid = siamese_forward(claim, sentence, wpack)
    logits, hid = jax.block_until_ready((logits, hid))

    ref_logits, ref_hid = reference_forward(sentence, raw)
    assert logits.shape == (BATCH, NUM_LABEL), logits.shape
    # Reference forward sets out1 = out2 -> L1 distance == 0 -> logits == bias.
    assert jnp.allclose(logits, ref_logits, atol=1e-2, rtol=1e-2), (logits, ref_logits)
    # Verify the (non-degenerate) conv/linear path against the pure-JAX reference.
    assert jnp.allclose(hid, ref_hid, atol=1e-2, rtol=1e-2), (
        float(jnp.max(jnp.abs(hid - ref_hid))))

    print("KERNEL_OK")
</pallas_src>

<mosaic_0001>
module attributes {stable_mosaic.version = 11 : i64} {
  func.func @siamese_kernel(%arg0: memref<64x1xi32, #tpu.memory_space<vmem>>, %arg1: memref<128x768xf32, #tpu.memory_space<vmem>>, %arg2: memref<8x128xf32, #tpu.memory_space<vmem>>) attributes {dimension_semantics = [], scalar_prefetch = 0 : i64, scratch_operands = 0 : i64, tpu.core_type = #tpu.core_type<tc>} {
    %c0 = arith.constant 0 : index
    %c0_0 = arith.constant 0 : index
    %0 = vector.load %arg0[%c0, %c0_0] : memref<64x1xi32, #tpu.memory_space<vmem>>, vector<64x1xi32>
    %1 = tpu.iota {dimensions = array<i32: 1>} : vector<64x128xi32>
    %2 = vector.broadcast %0 : vector<64x1xi32> to vector<64x128xi32>
    %3 = arith.cmpi eq, %1, %2 : vector<64x128xi32>
    %4 = arith.extui %3 : vector<64x128xi1> to vector<64x128xi32>
    %5 = arith.sitofp %4 : vector<64x128xi32> to vector<64x128xf32>
    %c0_1 = arith.constant 0 : index
    %c0_2 = arith.constant 0 : index
    %6 = vector.load %arg1[%c0_1, %c0_2] : memref<128x768xf32, #tpu.memory_space<vmem>>, vector<128x512xf32>
    %cst = arith.constant dense<0.000000e+00> : vector<64x512xf32>
    %7 = tpu.matmul %5, %6, %cst {dimension_numbers = #tpu.dot_dimension_numbers<[1], [0], [0], [1], [0, 0, 1, 1], [], []>} : vector<64x128xf32>, vector<128x512xf32>, vector<64x512xf32> -> vector<64x512xf32>
    %8 = vector.extract_strided_slice %7 {offsets = [0, 0], sizes = [64, 128], strides = [1, 1]} : vector<64x512xf32> to vector<64x128xf32>
    %9 = vector.extract_strided_slice %7 {offsets = [0, 128], sizes = [64, 128], strides = [1, 1]} : vector<64x512xf32> to vector<64x128xf32>
    %c63_i32 = arith.constant 63 : i32
    %10 = tpu.dynamic_rotate %9 by %c63_i32 dim 0 : vector<64x128xf32>, i32 -> vector<64x128xf32>
    %11 = vector.extract_strided_slice %7 {offsets = [0, 256], sizes = [64, 128], strides = [1, 1]} : vector<64x512xf32> to vector<64x128xf32>
    %c62_i32 = arith.constant 62 : i32
    %12 = tpu.dynamic_rotate %11 by %c62_i32 dim 0 : vector<64x128xf32>, i32 -> vector<64x128xf32>
    %13 = vector.extract_strided_slice %7 {offsets = [0, 384], sizes = [64, 128], strides = [1, 1]} : vector<64x512xf32> to vector<64x128xf32>
    %c61_i32 = arith.constant 61 : i32
    %14 = tpu.dynamic_rotate %13 by %c61_i32 dim 0 : vector<64x128xf32>, i32 -> vector<64x128xf32>
    %15 = arith.addf %8, %10 : vector<64x128xf32>
    %16 = arith.addf %12, %14 : vector<64x128xf32>
    %17 = arith.addf %15, %16 : vector<64x128xf32>
    %c0_3 = arith.constant 0 : index
    %c640 = arith.constant 640 : index
    %18 = vector.load %arg1[%c0_3, %c640] : memref<128x768xf32, #tpu.memory_space<vmem>>, vector<64x128xf32>
    %c64 = arith.constant 64 : index
    %c640_4 = arith.constant 640 : index
    %19 = vector.load %arg1[%c64, %c640_4] : memref<128x768xf32, #tpu.memory_space<vmem>>, vector<64x128xf32>
    %20 = arith.mulf %17, %18 : vector<64x128xf32>
    %21 = arith.addf %20, %19 : vector<64x128xf32>
    %22 = vector.shape_cast %21 : vector<64x128xf32> to vector<4x16x128xf32>
    %cst_5 = arith.constant dense<0xFF800000> : vector<4x128xf32>
    %23 = vector.multi_reduction <maximumf>, %22, %cst_5 [1] : vector<4x16x128xf32> to vector<4x128xf32>
    %24 = tpu.concatenate %23, %23 in 0 : vector<4x128xf32>, vector<4x128xf32> -> vector<8x128xf32>
    %c0_6 = arith.constant 0 : index
    %c512 = arith.constant 512 : index
    %25 = vector.load %arg1[%c0_6, %c512] : memref<128x768xf32, #tpu.memory_space<vmem>>, vector<128x128xf32>
    %cst_7 = arith.constant dense<0.000000e+00> : vector<8x128xf32>
    %26 = tpu.matmul %24, %25, %cst_7 {dimension_numbers = #tpu.dot_dimension_numbers<[1], [0], [0], [1], [0, 0, 1, 1], [], []>} : vector<8x128xf32>, vector<128x128xf32>, vector<8x128xf32> -> vector<8x128xf32>
    %c0_8 = arith.constant 0 : index
    %c0_9 = arith.constant 0 : index
    %27 = vector.load %arg2[%c0_8, %c0_9] : memref<8x128xf32, #tpu.memory_space<vmem>>, vector<8x128xf32>
    tpu.vector_store %arg2[%c0_8, %c0_9], %26 {strides = array<i32>} : memref<8x128xf32, #tpu.memory_space<vmem>>, vector<8x128xf32>,
    return
  }
}

</mosaic_0001>

<bundles_post_ra>
// kernel: siamese_forward.1
= control target key start
LH: loop header
LB: loop body
LE: loop exit
PB: predicated region body
PF: predicated region fallthrough
CT: control target
= control target key end

     0   :  { %7 = vsyncpa [#allocation3], 0  ;;  %s820_s9 = smov [#allocation2]   ;;  %s975_s0 = inlined_call_operand.vmem [shape: s32[64,1], index: 0, kind: input, shape index: {}]   ;;  %s976_s1 = inlined_call_operand.hbm [shape: f32[128,768], index: 1, kind: input, shape index: {}]   ;;  %s977_s2 = inlined_call_operand.vmem [shape: f32[8,128], index: 2, kind: output, shape index: {}]  }
   0x1   :  { %s15_s10 = sshll.u32 %s820_s9, 4  ;;  %s796_s13 = scalar_lea.hbm %s976_s1, 12288  ;;  %s16_s10 = int_to_ptr.vmem [resolvable:$true] %s15_s10 }
   0x2   :  { %p797_p0 = scmp.ne.s32.totalorder %s976_s1, %s796_s13  ;;  %p800_p1 = scmp.lt.u32.totalorder %s796_s13, %s976_s1 }
   0x4   :  { %p802_p2 = pnand %p800_p1, %p797_p0 }
   0x6   :  { %805 = shalt.err (!%p802_p2)
}
   0x7   :  { %s806_s18 = scalar_lea.vmem %s16_s10, 12288  ;;  %p811_p4 = scmp.lt.s32.totalorder %s16_s10, %s16_s10 }
   0x8   :  { %p807_p3 = scmp.ne.s32.totalorder %s16_s10, %s806_s18  ;;  %p812_p5 = scmp.lt.s32.totalorder %s806_s18, %s806_s18 }
   0xa   :  { %p813_p6 = por %p812_p5, %p811_p4 }
   0xc   :  { %p814_p7 = pnand %p813_p6, %p807_p3 }
   0xe   :  { %817 = shalt.err (!%p814_p7)
}
   0xf   :  { %s821_s19 = smov 768   ;;  %s822_s20 = smov 48  }
  0x10   :  { %21 = dma.hbm_to_vmem [thread:$0]  %s976_s1, 12288, %s16_s10, [#allocation3], %s821_s19, %s821_s19, %s822_s20  }
  0x11   :  { %818 = dma.done.wait [#allocation3], 12288  }
  0x12   :  { %819 = vsyncadd [#allocation3], 4294955008  ;;  %v823_v0 = vmov 0   ;;  %v27_v1 = vld [vmem:[%s975_s0 + $0x10] sm:$0xff]  ;;  %v25_v2 = vld [vmem:[%s975_s0] sm:$0xff]  ;;  %v824_v6 = vmov 0.0  }
  0x13   :  { %795 = vset.pattern.permute.xlu1 %v823_v0  ;;  %794 = vset.pattern.permute.xlu0 %v823_v0  ;;  %v28_v3 = vld [vmem:[%s975_s0 + $0x18] sm:$0xff]  ;;  %v26_v4 = vld [vmem:[%s975_s0 + $0x8] sm:$0xff]  ;;  %v29_v11 = vld [vmem:[%s975_s0 + $0x20] sm:$0xff]  ;;  %vm827_vm8 = vmmov 0   ;;  %vm514_vm12 = vcmask 1041409   ;;  %vm521_vm13 = vcmask 1045509  }
  0x14   :  { %42 = vperm.xlu1 %795, %v27_v1   ;;  %36 = vperm.xlu0 %794, %v25_v2   ;;  %v84_v5 = vld [vmem:[#allocation2 + $0x8] sm:$0xff]  ;;  %v88_v7 = vld [vmem:[#allocation2 + $0x38] sm:$0xff]  ;;  %v83_v14 = vld [vmem:[#allocation2] sm:$0xff]  ;;  %vm516_vm14 = vcmask 1042434   ;;  %vm523_vm15 = vcmask 1046534  }
  0x15   :  { %211 = vmatprep.mubr.f32.mxu0 %v824_v6  ;;  %324 = vmatprep.mubr.f32.mxu1 %v824_v6  ;;  %v86_v8 = vld [vmem:[#allocation2 + $0x18] sm:$0xff]  ;;  %v90_v9 = vld [vmem:[#allocation2 + $0x48] sm:$0xff]  ;;  %v698_v12 = vpack.c.bf16 %v88_v7, %v84_v5  ;;  %v87_v15 = vld [vmem:[#allocation2 + $0x30] sm:$0xff] }
  0x16   :  { %v30_v10 = vld [vmem:[%s975_s0 + $0x28] sm:$0xff]  ;;  %v730_v13 = vpack.c.bf16 %v90_v9, %v86_v8  ;;  %v85_v16 = vld [vmem:[#allocation2 + $0x10] sm:$0xff]  ;;  %v700_v17 = vpack.c.bf16 %v87_v15, %v83_v14  ;;  %v89_v18 = vld [vmem:[#allocation2 + $0x40] sm:$0xff] }
  0x17   :  { %v92_v19 = vld [vmem:[#allocation2 + $0x68] sm:$0xff]  ;;  %v96_v20 = vld [vmem:[#allocation2 + $0x98] sm:$0xff]  ;;  %699 = vmatprep.subr.bf16.mxu0 %v698_v12  ;;  %v732_v21 = vpack.c.bf16 %v89_v18, %v85_v16  ;;  %v91_v25 = vld [vmem:[#allocation2 + $0x60] sm:$0xff] }
  0x18   :  { %45 = vperm.xlu1 %795, %v28_v3   ;;  %39 = vperm.xlu0 %794, %v26_v4   ;;  %v702_v22 = vpack.c.bf16 %v96_v20, %v92_v19  ;;  %v94_v23 = vld [vmem:[#allocation2 + $0x78] sm:$0xff]  ;;  %v98_v24 = vld [vmem:[#allocation2 + $0xa8] sm:$0xff]  ;;  %v95_v27 = vld [vmem:[#allocation2 + $0x90] sm:$0xff] }
  0x19   :  { %731 = vmatprep.subr.bf16.mxu1 %v730_v13  ;;  %701 = vmatpush1.bf16.msra.mxu0 %v700_v17  ;;  %v734_v26 = vpack.c.bf16 %v98_v24, %v94_v23  ;;  %v93_v28 = vld [vmem:[#allocation2 + $0x70] sm:$0xff]  ;;  %v97_v29 = vld [vmem:[#allocation2 + $0xa0] sm:$0xff]  ;;  %v32_v30 = vld [vmem:[%s975_s0 + $0x38] sm:$0xff]  ;;  %v704_v32 = vpack.c.bf16 %v95_v27, %v91_v25 }
  0x1a   :  { %v31_v31 = vld [vmem:[%s975_s0 + $0x30] sm:$0xff]  ;;  %733 = vmatpush1.bf16.msra.mxu1 %v732_v21  ;;  %703 = vmatprep.subr.bf16.mxu0 %v702_v22  ;;  %v736_v33 = vpack.c.bf16 %v97_v29, %v93_v28  ;;  %v100_v34 = vld [vmem:[#allocation2 + $0xc8] sm:$0xff]  ;;  %v104_v35 = vld [vmem:[#allocation2 + $0xf8] sm:$0xff] }
  0x1b   :  { %v102_v36 = vld [vmem:[#allocation2 + $0xd8] sm:$0xff]  ;;  %v706_v37 = vpack.c.bf16 %v104_v35, %v100_v34  ;;  %v106_v38 = vld [vmem:[#allocation2 + $0x108] sm:$0xff]  ;;  %v99_v39 = vld [vmem:[#allocation2 + $0xc0] sm:$0xff]  ;;  %735 = vmatprep.subr.bf16.mxu1 %v734_v26 }
  0x1c   :  { %51 = vperm.xlu1 %795, %v30_v10   ;;  %48 = vperm.xlu0 %794, %v29_v11   ;;  %v103_v40 = vld [vmem:[#allocation2 + $0xf0] sm:$0xff]  ;;  %v738_v41 = vpack.c.bf16 %v106_v38, %v102_v36  ;;  %v105_v43 = vld [vmem:[#allocation2 + $0x100] sm:$0xff]  ;;  %v108_v44 = vld [vmem:[#allocation2 + $0x128] sm:$0xff] }
  0x1d   :  { %v101_v42 = vld [vmem:[#allocation2 + $0xd0] sm:$0xff]  ;;  %705 = vmatpush1.bf16.msra.mxu0 %v704_v32  ;;  %v708_v45 = vpack.c.bf16 %v103_v40, %v99_v39  ;;  %v112_v46 = vld [vmem:[#allocation2 + $0x158] sm:$0xff]  ;;  %v114_v48 = vld [vmem:[#allocation2 + $0x168] sm:$0xff] }
  0x1e   :  { %v110_v47 = vld [vmem:[#allocation2 + $0x138] sm:$0xff]  ;;  %737 = vmatpush1.bf16.msra.mxu1 %v736_v33  ;;  %707 = vmatprep.subr.bf16.mxu0 %v706_v37  ;;  %v740_v49 = vpack.c.bf16 %v105_v43, %v101_v42  ;;  %v710_v50 = vpack.c.bf16 %v112_v46, %v108_v44  ;;  %v107_v51 = vld [vmem:[#allocation2 + $0x120] sm:$0xff]  ;;  %v111_v52 = vld [vmem:[#allocation2 + $0x150] sm:$0xff]  ;;  %v33_v43 = vlaneseq  ;;  %v825_v46 = vmov 1.0  }
  0x1f   :  { %v109_v53 = vld [vmem:[#allocation2 + $0x130] sm:$0xff]  ;;  %v742_v54 = vpack.c.bf16 %v114_v48, %v110_v47  ;;  %v113_v55 = vld [vmem:[#allocation2 + $0x160] sm:$0xff]  ;;  %v116_v56 = vld [vmem:[#allocation2 + $0x188] sm:$0xff]  ;;  %739 = vmatprep.subr.bf16.mxu1 %v738_v41  ;;  %v712_v60 = vpack.c.bf16 %v111_v52, %v107_v51 }
  0x20   :  { %57 = vperm.xlu1 %795, %v32_v30   ;;  %54 = vperm.xlu0 %794, %v31_v31   ;;  %v120_v57 = vld [vmem:[#allocation2 + $0x1b8] sm:$0xff]  ;;  %v122_v59 = vld [vmem:[#allocation2 + $0x1c8] sm:$0xff]  ;;  %v744_v61 = vpack.c.bf16 %v113_v55, %v109_v53  ;;  %v115_v63 = vld [vmem:[#allocation2 + $0x180] sm:$0xff]  ;;  %v34_v44 = vand.u32 127, %v33_v43 }
  0x21   :  { %v118_v58 = vld [vmem:[#allocation2 + $0x198] sm:$0xff]  ;;  %709 = vmatpush1.bf16.msra.mxu0 %v708_v45  ;;  %v714_v62 = vpack.c.bf16 %v120_v57, %v116_v56  ;;  %v119_v0 = vld [vmem:[#allocation2 + $0x1b0] sm:$0xff]  ;;  %v121_v3 = vld [vmem:[#allocation2 + $0x1c0] sm:$0xff]  ;;  %v826_v57 = vmov 0.0|0.0  }
  0x22   :  { %741 = vmatpush1.bf16.msra.mxu1 %v740_v49  ;;  %711 = vmatprep.subr.bf16.mxu0 %v710_v50  ;;  %v117_v1 = vld [vmem:[#allocation2 + $0x190] sm:$0xff]  ;;  %v746_v2 = vpack.c.bf16 %v122_v59, %v118_v58  ;;  %v124_v4 = vld [vmem:[#allocation2 + $0x1e8] sm:$0xff]  ;;  %v128_v5 = vld [vmem:[#allocation2 + $0x218] sm:$0xff]  ;;  %v716_v9 = vpack.c.bf16 %v119_v0, %v115_v63 }
  0x23   :  { %743 = vmatprep.subr.bf16.mxu1 %v742_v54  ;;  %v126_v7 = vld [vmem:[#allocation2 + $0x1f8] sm:$0xff]  ;;  %v130_v8 = vld [vmem:[#allocation2 + $0x228] sm:$0xff]  ;;  %v748_v10 = vpack.c.bf16 %v121_v3, %v117_v1  ;;  %v718_v11 = vpack.c.bf16 %v128_v5, %v124_v4  ;;  %v123_v12 = vld [vmem:[#allocation2 + $0x1e0] sm:$0xff] }
  0x24   :  { %v127_v13 = vld [vmem:[#allocation2 + $0x210] sm:$0xff]  ;;  %v750_v15 = vpack.c.bf16 %v130_v8, %v126_v7  ;;  %v129_v16 = vld [vmem:[#allocation2 + $0x220] sm:$0xff]  ;;  %v132_v17 = vld [vmem:[#allocation2 + $0x248] sm:$0xff] }
  0x25   :  { %713 = vmatpush1.bf16.msra.mxu0 %v712_v60  ;;  %v125_v14 = vld [vmem:[#allocation2 + $0x1f0] sm:$0xff]  ;;  %v136_v18 = vld [vmem:[#allocation2 + $0x278] sm:$0xff]  ;;  %v138_v20 = vld [vmem:[#allocation2 + $0x288] sm:$0xff]  ;;  %v720_v21 = vpack.c.bf16 %v127_v13, %v123_v12 }
  0x26   :  { %745 = vmatpush1.bf16.msra.mxu1 %v744_v61  ;;  %715 = vmatprep.subr.bf16.mxu0 %v714_v62  ;;  %v134_v19 = vld [vmem:[#allocation2 + $0x258] sm:$0xff]  ;;  %v752_v22 = vpack.c.bf16 %v129_v16, %v125_v14  ;;  %v722_v23 = vpack.c.bf16 %v136_v18, %v132_v17  ;;  %v131_v24 = vld [vmem:[#allocation2 + $0x240] sm:$0xff]  ;;  %v135_v25 = vld [vmem:[#allocation2 + $0x270] sm:$0xff]  ;;  %v900_v18 = vshrl.u32 %v33_v43, 7 }
  0x27   :  { %747 = vmatprep.subr.bf16.mxu1 %v746_v2  ;;  %v133_v26 = vld [vmem:[#allocation2 + $0x250] sm:$0xff]  ;;  %v754_v27 = vpack.c.bf16 %v138_v20, %v134_v19  ;;  %v137_v28 = vld [vmem:[#allocation2 + $0x280] sm:$0xff]  ;;  %v140_v29 = vld [vmem:[#allocation2 + $0x2a8] sm:$0xff]  ;;  %v724_v33 = vpack.c.bf16 %v135_v25, %v131_v24 }
  0x28   :  { %v144_v30 = vld [vmem:[#allocation2 + $0x2d8] sm:$0xff]  ;;  %v146_v32 = vld [vmem:[#allocation2 + $0x2e8] sm:$0xff]  ;;  %v756_v34 = vpack.c.bf16 %v137_v28, %v133_v26  ;;  %v139_v36 = vld [vmem:[#allocation2 + $0x2a0] sm:$0xff]  ;;  %vm400_vm9 = vcmp.lt.s32.totalorder %v900_v18, 6  ;;  %vm383_vm10 = vcmp.lt.s32.totalorder %v900_v18, 7  ;;  %vm417_vm11 = vcmp.lt.s32.totalorder %v900_v18, 5 }
  0x29   :  { %717 = vmatpush1.bf16.msra.mxu0 %v716_v9  ;;  %v142_v31 = vld [vmem:[#allocation2 + $0x2b8] sm:$0xff]  ;;  %v726_v35 = vpack.c.bf16 %v144_v30, %v140_v29  ;;  %v143_v37 = vld [vmem:[#allocation2 + $0x2d0] sm:$0xff]  ;;  %v145_v40 = vld [vmem:[#allocation2 + $0x2e0] sm:$0xff] }
  0x2a   :  { %749 = vmatpush1.bf16.msra.mxu1 %v748_v10  ;;  %719 = vmatprep.subr.bf16.mxu0 %v718_v11  ;;  %v758_v38 = vpack.c.bf16 %v146_v32, %v142_v31  ;;  %v141_v39 = vld [vmem:[#allocation2 + $0x2b0] sm:$0xff]  ;;  %v728_v41 = vpack.c.bf16 %v143_v37, %v139_v36  ;;  %v530_v54 = vld [vmem:[#allocation2 + $0x20] sm:$0xff] }
  0x2b   :  { %751 = vmatprep.subr.bf16.mxu1 %v750_v15  ;;  %v760_v42 = vpack.c.bf16 %v145_v40, %v141_v39  ;;  %v531_v55 = vld [vmem:[#allocation2 + $0x50] sm:$0xff]  ;;  %v532_v58 = vld [vmem:[#allocation2 + $0x80] sm:$0xff] }
  0x2c   :  { %v763_v56 = vpack.c.bf16 %v531_v55, %v530_v54  ;;  %v533_v59 = vld [vmem:[#allocation2 + $0xb0] sm:$0xff]  ;;  %v534_v61 = vld [vmem:[#allocation2 + $0xe0] sm:$0xff]  ;;  %v451_v54 = vld [vmem:[#allocation2 + $0x58] sm:$0xff] }
  0x2d   :  { %721 = vmatpush1.bf16.msra.mxu0 %v720_v21  ;;  %v766_v60 = vpack.c.bf16 %v533_v59, %v532_v58  ;;  %v535_v62 = vld [vmem:[#allocation2 + $0x110] sm:$0xff]  ;;  %v536_v0 = vld [vmem:[#allocation2 + $0x140] sm:$0xff] }
  0x2e   :  { %753 = vmatpush1.bf16.msra.mxu1 %v752_v22  ;;  %723 = vmatprep.subr.bf16.mxu0 %v722_v23  ;;  %v769_v63 = vpack.c.bf16 %v535_v62, %v534_v61  ;;  %v537_v1 = vld [vmem:[#allocation2 + $0x170] sm:$0xff]  ;;  %v538_v3 = vld [vmem:[#allocation2 + $0x1a0] sm:$0xff]  ;;  %v459_v61 = vld [vmem:[#allocation2 + $0x1d8] sm:$0xff] }
  0x2f   :  { %755 = vmatprep.subr.bf16.mxu1 %v754_v27  ;;  %v772_v2 = vpack.c.bf16 %v537_v1, %v536_v0  ;;  %v539_v4 = vld [vmem:[#allocation2 + $0x1d0] sm:$0xff]  ;;  %v540_v7 = vld [vmem:[#allocation2 + $0x200] sm:$0xff] }
  0x30   :  { %v775_v5 = vpack.c.bf16 %v539_v4, %v538_v3  ;;  %v541_v8 = vld [vmem:[#allocation2 + $0x230] sm:$0xff]  ;;  %v542_v10 = vld [vmem:[#allocation2 + $0x260] sm:$0xff] }
  0x31   :  { %725 = vmatpush1.bf16.msra.mxu0 %v724_v33  ;;  %v778_v9 = vpack.c.bf16 %v541_v8, %v540_v7  ;;  %v543_v11 = vld [vmem:[#allocation2 + $0x290] sm:$0xff]  ;;  %v544_v13 = vld [vmem:[#allocation2 + $0x2c0] sm:$0xff] }
  0x32   :  { %757 = vmatpush1.bf16.msra.mxu1 %v756_v34  ;;  %727 = vmatprep.subr.bf16.mxu0 %v726_v35  ;;  %v781_v12 = vpack.c.bf16 %v543_v11, %v542_v10  ;;  %v545_v14 = vld [vmem:[#allocation2 + $0x2f0] sm:$0xff] }
  0x33   :  { %759 = vmatprep.subr.bf16.mxu1 %v758_v38  ;;  %v784_v15 = vpack.c.bf16 %v545_v14, %v544_v13 }
  0x35   :  { %729 = vmatpush1.bf16.msra.mxu0 %v728_v41 }
  0x36   :  { %761 = vmatpush1.bf16.msra.mxu1 %v760_v42  ;;  %762 = vmatprep.subr.bf16.mxu0 %v826_v57 }
  0x93   :  { %v37_v45 = vpop.permute.xlu0 %36  ;;  %v43_v48 = vpop.permute.xlu1 %42 }
  0x94   :  { %vm59_vm0 = vcmp.eq.s32.totalorder %v34_v44, %v37_v45  ;;  %vm61_vm2 = vcmp.eq.s32.totalorder %v34_v44, %v43_v48 }
  0x95   :  { %630 = vmatmul.mubr.msk.f32.vlgmr.msra.gmra.mrb[0].mxu0 %vm59_vm0, %v825_v46  ;;  %638 = vmatmul.mubr.msk.f32.vlgmr.msra.gmra.mrb[0].mxu1 %vm59_vm0, %v825_v46  ;;  %vm518_vm0 = vcmask 1043459  }
  0x96   :  { %217 = vmatprep.mubr.f32.mxu0 %v824_v6  ;;  %330 = vmatprep.mubr.f32.mxu1 %v824_v6 }
  0x97   :  { %v40_v47 = vpop.permute.xlu0 %39  ;;  %v46_v49 = vpop.permute.xlu1 %45  ;;  %764 = vmatpush3.bf16.msra.mxu0 %v763_v56 }
  0x98   :  { %vm60_vm1 = vcmp.eq.s32.totalorder %v34_v44, %v40_v47  ;;  %vm62_vm3 = vcmp.eq.s32.totalorder %v34_v44, %v46_v49  ;;  %765 = vmatprep.subr.bf16.mxu0 %v826_v57 }
  0x99   :  { %631 = vmatmul.mubr.msk.f32.gmra.mrb[2].mxu0 %vm60_vm1, %v825_v46  ;;  %639 = vmatmul.mubr.msk.f32.gmra.mrb[2].mxu1 %vm60_vm1, %v825_v46  ;;  %vm525_vm1 = vcmask 1047559  }
  0x9a   :  { %223 = vmatprep.mubr.f32.mxu0 %v824_v6  ;;  %336 = vmatprep.mubr.f32.mxu1 %v824_v6 }
  0x9b   :  { %v49_v50 = vpop.permute.xlu0 %48  ;;  %v52_v51 = vpop.permute.xlu1 %51  ;;  %767 = vmatpush3.bf16.msra.mxu0 %v766_v60  ;;  %v458_v60 = vld [vmem:[#allocation2 + $0x1a8] sm:$0xff] }
  0x9c   :  { %vm63_vm4 = vcmp.eq.s32.totalorder %v34_v44, %v49_v50  ;;  %vm64_vm5 = vcmp.eq.s32.totalorder %v34_v44, %v52_v51  ;;  %768 = vmatprep.subr.bf16.mxu0 %v826_v57 }
  0x9d   :  { %632 = vmatmul.mubr.msk.f32.gmra.mrb[4].mxu0 %vm61_vm2, %v825_v46  ;;  %640 = vmatmul.mubr.msk.f32.gmra.mrb[4].mxu1 %vm61_vm2, %v825_v46  ;;  %vm528_vm2 = vcmask 1043456  }
  0x9e   :  { %229 = vmatprep.mubr.f32.mxu0 %v824_v6  ;;  %342 = vmatprep.mubr.f32.mxu1 %v824_v6 }
  0x9f   :  { %v55_v52 = vpop.permute.xlu0 %54  ;;  %v58_v53 = vpop.permute.xlu1 %57  ;;  %770 = vmatpush3.bf16.msra.mxu0 %v769_v63 }
  0xa0   :  { %vm65_vm6 = vcmp.eq.s32.totalorder %v34_v44, %v55_v52  ;;  %vm66_vm7 = vcmp.eq.s32.totalorder %v34_v44, %v58_v53  ;;  %771 = vmatprep.subr.bf16.mxu0 %v826_v57  ;;  %v450_v44 = vld [vmem:[#allocation2 + $0x28] sm:$0xff] }
  0xa1   :  { %633 = vmatmul.mubr.msk.f32.gmra.mrb[6].mxu0 %vm62_vm3, %v825_v46  ;;  %641 = vmatmul.mubr.msk.f32.gmra.mrb[6].mxu1 %vm62_vm3, %v825_v46 }
  0xa2   :  { %235 = vmatprep.mubr.f32.mxu0 %v824_v6  ;;  %348 = vmatprep.mubr.f32.mxu1 %v824_v6 }
  0xa3   :  { %773 = vmatpush3.bf16.msra.mxu0 %v772_v2 }
  0xa4   :  { %774 = vmatprep.subr.bf16.mxu0 %v826_v57 }
  0xa5   :  { %634 = vmatmul.mubr.msk.f32.gmra.mrb[8].mxu0 %vm63_vm4, %v825_v46  ;;  %642 = vmatmul.mubr.msk.f32.gmra.mrb[8].mxu1 %vm63_vm4, %v825_v46 }
  0xa6   :  { %241 = vmatprep.mubr.f32.mxu0 %v824_v6  ;;  %354 = vmatprep.mubr.f32.mxu1 %v824_v6 }
  0xa7   :  { %776 = vmatpush3.bf16.msra.mxu0 %v775_v5 }
  0xa8   :  { %777 = vmatprep.subr.bf16.mxu0 %v826_v57 }
  0xa9   :  { %635 = vmatmul.mubr.msk.f32.gmra.mrb[10].mxu0 %vm64_vm5, %v825_v46  ;;  %643 = vmatmul.mubr.msk.f32.gmra.mrb[10].mxu1 %vm64_vm5, %v825_v46 }
  0xaa   :  { %247 = vmatprep.mubr.f32.mxu0 %v824_v6  ;;  %360 = vmatprep.mubr.f32.mxu1 %v824_v6 }
  0xab   :  { %779 = vmatpush3.bf16.msra.mxu0 %v778_v9 }
  0xac   :  { %780 = vmatprep.subr.bf16.mxu0 %v826_v57 }
  0xad   :  { %636 = vmatmul.mubr.msk.f32.gmra.mrb[12].mxu0 %vm65_vm6, %v825_v46  ;;  %644 = vmatmul.mubr.msk.f32.gmra.mrb[12].mxu1 %vm65_vm6, %v825_v46 }
  0xae   :  { %253 = vmatprep.mubr.f32.mxu0 %v824_v6  ;;  %366 = vmatprep.mubr.f32.mxu1 %v824_v6 }
  0xaf   :  { %782 = vmatpush3.bf16.msra.mxu0 %v781_v12 }
  0xb0   :  { %783 = vmatprep.subr.bf16.mxu0 %v826_v57 }
  0xb1   :  { %637 = vmatmul.mubr.msk.f32.gmra.mrb[14].mxu0 %vm66_vm7, %v825_v46  ;;  %645 = vmatmul.mubr.msk.f32.gmra.mrb[14].mxu1 %vm66_vm7, %v825_v46 }
  0xb2   :  { %695 = vmatprep.mubr.msk.f32.mxu0 %vm827_vm8, %v824_v6 }
  0xb3   :  { %785 = vmatpush3.bf16.msra.mxu0 %v784_v15  ;;  %v452_v15 = vld [vmem:[#allocation2 + $0x88] sm:$0xff] }
 0x168   :  { %v213_v16 = vpop.f32.mrb[0].mxu0  ;;  %v897_v17 = vpop.f32.mrb[0].mxu1 }
 0x169   :  { %v902_v19 = vpop.f32.mrb[1].mxu0  ;;  %v904_v20 = vpop.f32.mrb[1].mxu1  ;;  %v392_v6 = vrot.slane %v897_v17, 2 }
 0x16a   :  { %v373_v26 = vrot.slane %v902_v19, 1  ;;  %v409_v27 = vrot.slane %v904_v20, 3 }
 0x16c   :  { %v219_v21 = vpop.f32.mrb[2].mxu0  ;;  %v332_v22 = vpop.f32.mrb[2].mxu1 }
 0x16d   :  { %v393_v23 = vrot.slane %v332_v22, 2  ;;  %v221_v24 = vpop.f32.mrb[3].mxu0  ;;  %v334_v25 = vpop.f32.mrb[3].mxu1 }
 0x16e   :  { %v374_v28 = vrot.slane %v221_v24, 1  ;;  %v410_v29 = vrot.slane %v334_v25, 3 }
 0x16f   :  { %v407_v30 = vsel %vm400_vm9, %v392_v6, %v393_v23 }
 0x170   :  { %v390_v31 = vsel %vm383_vm10, %v373_v26, %v374_v28  ;;  %v424_v32 = vsel %vm417_vm11, %v409_v27, %v410_v29  ;;  %v225_v33 = vpop.f32.mrb[4].mxu0  ;;  %v338_v34 = vpop.f32.mrb[4].mxu1 }
 0x171   :  { %v426_v35 = vadd.f32 %v390_v31, %v213_v16  ;;  %v434_v36 = vadd.f32 %v424_v32, %v407_v30  ;;  %v394_v37 = vrot.slane %v338_v34, 2  ;;  %v227_v38 = vpop.f32.mrb[5].mxu0  ;;  %v340_v39 = vpop.f32.mrb[5].mxu1  ;;  %v453_v31 = vld [vmem:[#allocation2 + $0xb8] sm:$0xff] }
 0x172   :  { %v375_v40 = vrot.slane %v227_v38, 1  ;;  %v411_v41 = vrot.slane %v340_v39, 3  ;;  %v460_v38 = vld [vmem:[#allocation2 + $0x208] sm:$0xff]  ;;  %v461_v39 = vld [vmem:[#allocation2 + $0x238] sm:$0xff] }
 0x173   :  { %v442_v42 = vadd.f32 %v434_v36, %v426_v35  ;;  %v406_v43 = vsel %vm400_vm9, %v393_v23, %v394_v37 }
 0x174   :  { %v389_v45 = vsel %vm383_vm10, %v374_v28, %v375_v40  ;;  %v423_v46 = vsel %vm417_vm11, %v410_v29, %v411_v41  ;;  %v231_v47 = vpop.f32.mrb[6].mxu0  ;;  %v344_v48 = vpop.f32.mrb[6].mxu1 }
 0x175   :  { %v427_v49 = vadd.f32 %v389_v45, %v219_v21  ;;  %v435_v50 = vadd.f32 %v423_v46, %v406_v43  ;;  %v395_v51 = vrot.slane %v344_v48, 2  ;;  %v233_v52 = vpop.f32.mrb[7].mxu0  ;;  %v346_v53 = vpop.f32.mrb[7].mxu1  ;;  %v466_v57 = vmul.f32 %v450_v44, %v442_v42 }
 0x176   :  { %v376_v55 = vrot.slane %v233_v52, 1  ;;  %v412_v56 = vrot.slane %v346_v53, 3 }
 0x177   :  { %v443_v58 = vadd.f32 %v435_v50, %v427_v49  ;;  %v405_v59 = vsel %vm400_vm9, %v394_v37, %v395_v51  ;;  %v474_v11 = vadd.f32 %v466_v57, %v458_v60 }
 0x178   :  { %v388_v62 = vsel %vm383_vm10, %v375_v40, %v376_v55  ;;  %v422_v63 = vsel %vm417_vm11, %v411_v41, %v412_v56  ;;  %v237_v0 = vpop.f32.mrb[8].mxu0  ;;  %v350_v1 = vpop.f32.mrb[8].mxu1 }
 0x179   :  { %v467_v2 = vmul.f32 %v451_v54, %v443_v58  ;;  %v428_v3 = vadd.f32 %v388_v62, %v225_v33  ;;  %v436_v4 = vadd.f32 %v422_v63, %v405_v59  ;;  %v396_v5 = vrot.slane %v350_v1, 2  ;;  %v239_v7 = vpop.f32.mrb[9].mxu0  ;;  %v352_v8 = vpop.f32.mrb[9].mxu1  ;;  %v454_v58 = vld [vmem:[#allocation2 + $0xe8] sm:$0xff] }
 0x17a   :  { %v377_v9 = vrot.slane %v239_v7, 1  ;;  %v413_v10 = vrot.slane %v352_v8, 3 }
 0x17b   :  { %v475_v12 = vadd.f32 %v467_v2, %v459_v61  ;;  %v444_v13 = vadd.f32 %v436_v4, %v428_v3  ;;  %v404_v14 = vsel %vm400_vm9, %v395_v51, %v396_v5 }
 0x17c   :  { %v387_v16 = vsel %vm383_vm10, %v376_v55, %v377_v9  ;;  %v421_v21 = vsel %vm417_vm11, %v412_v56, %v413_v10  ;;  %v243_v22 = vpop.f32.mrb[10].mxu0  ;;  %v356_v23 = vpop.f32.mrb[10].mxu1 }
 0x17d   :  { %v482_v24 = vmax.f32 %v474_v11, %v475_v12  ;;  %v429_v25 = vadd.f32 %v387_v16, %v231_v47  ;;  %v437_v28 = vadd.f32 %v421_v21, %v404_v14  ;;  %v245_v29 = vpop.f32.mrb[11].mxu0  ;;  %v358_v30 = vpop.f32.mrb[11].mxu1  ;;  %v397_v32 = vrot.slane %v356_v23, 2  ;;  %v455_v12 = vld [vmem:[#allocation2 + $0x118] sm:$0xff] }
 0x17e   :  { %v378_v33 = vrot.slane %v245_v29, 1  ;;  %v414_v34 = vrot.slane %v358_v30, 3  ;;  %v468_v36 = vmul.f32 %v452_v15, %v444_v13  ;;  %v463_v23 = vld [vmem:[#allocation2 + $0x298] sm:$0xff] }
 0x17f   :  { %v483_v35 = vrot.slane %v482_v24, 4  ;;  %v445_v37 = vadd.f32 %v437_v28, %v429_v25  ;;  %v403_v40 = vsel %vm400_vm9, %v396_v5, %v397_v32 }
 0x180   :  { %v386_v41 = vsel %vm383_vm10, %v377_v9, %v378_v33  ;;  %v420_v42 = vsel %vm417_vm11, %v413_v10, %v414_v34  ;;  %v249_v43 = vpop.f32.mrb[12].mxu0  ;;  %v362_v44 = vpop.f32.mrb[12].mxu1  ;;  %v476_v55 = vadd.f32 %v468_v36, %v460_v38  ;;  %v457_v36 = vld [vmem:[#allocation2 + $0x178] sm:$0xff]  ;;  %v464_v38 = vld [vmem:[#allocation2 + $0x2c8] sm:$0xff] }
 0x181   :  { %v484_v45 = vmax.f32 %v482_v24, %v483_v35  ;;  %v469_v46 = vmul.f32 %v453_v31, %v445_v37  ;;  %v430_v47 = vadd.f32 %v386_v41, %v237_v0  ;;  %v438_v48 = vadd.f32 %v420_v42, %v403_v40  ;;  %v251_v49 = vpop.f32.mrb[13].mxu0  ;;  %v364_v50 = vpop.f32.mrb[13].mxu1  ;;  %v465_v41 = vld [vmem:[#allocation2 + $0x2f8] sm:$0xff] }
 0x182   :  { %v398_v51 = vrot.slane %v362_v44, 2  ;;  %v379_v52 = vrot.slane %v251_v49, 1  ;;  %v415_v53 = vrot.slane %v364_v50, 3 }
 0x183   :  { %v485_v54 = vrot.slane %v484_v45, 2  ;;  %v477_v56 = vadd.f32 %v469_v46, %v461_v39  ;;  %v446_v57 = vadd.f32 %v438_v48, %v430_v47 }
 0x184   :  { %v402_v59 = vsel %vm400_vm9, %v397_v32, %v398_v51  ;;  %v385_v60 = vsel %vm383_vm10, %v378_v33, %v379_v52  ;;  %v419_v61 = vsel %vm417_vm11, %v414_v34, %v415_v53  ;;  %v255_v62 = vpop.f32.mrb[14].mxu0  ;;  %v368_v63 = vpop.f32.mrb[14].mxu1  ;;  %v456_v33 = vld [vmem:[#allocation2 + $0x148] sm:$0xff] }
 0x185   :  { %v489_v0 = vmax.f32 %v476_v55, %v477_v56  ;;  %v431_v1 = vadd.f32 %v385_v60, %v243_v22  ;;  %v257_v2 = vpop.f32.mrb[15].mxu0  ;;  %v370_v3 = vpop.f32.mrb[15].mxu1  ;;  %v439_v4 = vadd.f32 %v419_v61, %v402_v59  ;;  %v399_v5 = vrot.slane %v368_v63, 2  ;;  %v462_v22 = vld [vmem:[#allocation2 + $0x268] sm:$0xff] }
 0x186   :  { %v380_v7 = vrot.slane %v257_v2, 1  ;;  %v416_v8 = vrot.slane %v370_v3, 3  ;;  %v486_v9 = vmax.f32 %v484_v45, %v485_v54  ;;  %v470_v11 = vmul.f32 %v454_v58, %v446_v57 }
 0x187   :  { %v490_v10 = vrot.slane %v489_v0, 4  ;;  %v447_v13 = vadd.f32 %v439_v4, %v431_v1  ;;  %v401_v14 = vsel %vm400_vm9, %v398_v51, %v399_v5  ;;  %v408_v15 = vsel %vm400_vm9, %v399_v5, %v392_v6 }
 0x188   :  { %v384_v16 = vsel %vm383_vm10, %v379_v52, %v380_v7  ;;  %v391_v24 = vsel %vm383_vm10, %v380_v7, %v373_v26  ;;  %v418_v28 = vsel %vm417_vm11, %v415_v53, %v416_v8  ;;  %v425_v6 = vsel %vm417_vm11, %v416_v8, %v409_v27 }
 0x189   :  { %v491_v21 = vmax.f32 %v489_v0, %v490_v10  ;;  %v432_v25 = vadd.f32 %v384_v16, %v249_v43  ;;  %v471_v29 = vmul.f32 %v455_v12, %v447_v13  ;;  %v433_v17 = vadd.f32 %v391_v24, %v255_v62 }
 0x18a   :  { %v440_v30 = vadd.f32 %v418_v28, %v401_v14  ;;  %v441_v32 = vadd.f32 %v425_v6, %v408_v15  ;;  %v478_v34 = vadd.f32 %v470_v11, %v462_v22  ;;  %v487_v39 = vrot.slane %v486_v9, 1 }
 0x18b   :  { %v492_v31 = vrot.slane %v491_v21, 2  ;;  %v479_v19 = vadd.f32 %v471_v29, %v463_v23 }
 0x18c   :  { %v448_v35 = vadd.f32 %v440_v30, %v432_v25  ;;  %v449_v37 = vadd.f32 %v441_v32, %v433_v17  ;;  %v488_v45 = vmax.f32 %v486_v9, %v487_v39 }
 0x18d   :  { %v493_v26 = vmax.f32 %v491_v21, %v492_v31  ;;  %v496_v40 = vmax.f32 %v478_v34, %v479_v19 }
 0x18e   :  { %v472_v42 = vmul.f32 %v456_v33, %v448_v35  ;;  %v473_v43 = vmul.f32 %v457_v36, %v449_v37 }
 0x18f   :  { %v494_v20 = vrot.slane %v493_v26, 1  ;;  %v497_v44 = vrot.slane %v496_v40, 4 }
 0x190   :  { %v480_v18 = vadd.f32 %v472_v42, %v464_v38  ;;  %v481_v27 = vadd.f32 %v473_v43, %v465_v41 }
 0x191   :  { %v495_v46 = vmax.f32 %v493_v26, %v494_v20  ;;  %v498_v47 = vmax.f32 %v496_v40, %v497_v44 }
 0x192   :  { %v503_v48 = vmax.f32 %v480_v18, %v481_v27 }
 0x193   :  { %v515_v49 = vsel %vm514_vm12, %v495_v46, %v488_v45  ;;  %v522_v50 = vsel %vm521_vm13, %v495_v46, %v488_v45  ;;  %v499_v51 = vrot.slane %v498_v47, 2 }
 0x194   :  { %v504_v52 = vrot.slane %v503_v48, 4 }
 0x195   :  { %v500_v53 = vmax.f32 %v498_v47, %v499_v51 }
 0x196   :  { %v505_v54 = vmax.f32 %v503_v48, %v504_v52 }
 0x197   :  { %v501_v55 = vrot.slane %v500_v53, 1 }
 0x198   :  { %v506_v56 = vrot.slane %v505_v54, 2 }
 0x199   :  { %v502_v57 = vmax.f32 %v500_v53, %v501_v55 }
 0x19a   :  { %v507_v58 = vmax.f32 %v505_v54, %v506_v56 }
 0x19b   :  { %v517_v59 = vsel %vm516_vm14, %v502_v57, %v515_v49  ;;  %v524_v60 = vsel %vm523_vm15, %v502_v57, %v522_v50 }
 0x19c   :  { %v508_v61 = vrot.slane %v507_v58, 1 }
 0x19e   :  { %v509_v62 = vmax.f32 %v507_v58, %v508_v61 }
 0x1a0   :  { %v519_v63 = vsel %vm518_vm0, %v509_v62, %v517_v59  ;;  %v526_v0 = vsel %vm525_vm1, %v509_v62, %v524_v60 }
 0x1a1   :  { %v529_v1 = vsel %vm528_vm2, %v519_v63, %v526_v0 }
 0x1a2   :  { %696 = vmatmul.mubr.f32.vlgmr.msra.gmra.mrb[16].mxu0 %v529_v1 }
 0x275   :  { %v612_v2 = vpop.f32.mrb[16].mxu0 }
 0x276   :  { %616 = vst [vmem:[%s977_s2] sm:$0xff] %v612_v2  ;;  %v697_v3 = vpop.f32.mrb[17].mxu0 }
 0x277   :  { %621 = vsyncpa [#allocation3], 1 }

</bundles_post_ra>
